<compile_context>
chip_gen: v5e
topology: v5e:2x2
jax: 0.10.0
libtpu: 0.0.40
codegen_flags: <defaults>
</compile_context>

<pallas_src>
import functools

import jax
import jax.numpy as jnp
from jax.experimental import pallas as pl
from jax.experimental.pallas import tpu as pltpu

_LANE = 128
_SUBLANE = 8


def _round_up(n, m):
    return ((n + m - 1) // m) * m


def _fused_ae_kernel(*refs, n_enc, n_dec, matmul_dtype):
    """Entire AutoEncoder forward on one (block_b, F0_pad) batch tile.

    refs = (x_ref, biases_ref, w0, w1, ..., o_ref).  Weights and the packed bias
    table have constant index_maps -> loaded to VMEM once and resident; all
    intermediate activations live in vregs/VMEM and never round-trip HBM.
    """
    x_ref, b_ref = refs[0], refs[1]
    o_ref = refs[-1]
    w_refs = refs[2:-1]

    mm_dt = jnp.dtype(matmul_dtype)
    biases = b_ref[...]                              # (n_layers, Fmax) f32, tiny

    y = x_ref[...]
    if y.dtype != jnp.float32:
        y = y.astype(jnp.float32)

    for layer in range(n_enc + n_dec):
        w = w_refs[layer][...]                       # already matmul_dtype (pre-cast)
        fout = w.shape[1]                            # padded (multiple of 128)
        lhs = y if y.dtype == mm_dt else y.astype(mm_dt)
        # MXU matmul, f32 accumulate.
        y = jnp.dot(lhs, w, preferred_element_type=jnp.float32)
        # f32 epilogue: bias + activation (keeps v5e VPU/EUP on the fast path).
        y = y + biases[layer:layer + 1, :fout]       # (1, fout) broadcast over rows
        if layer < n_enc:
            y = jnp.maximum(y, 0.0)                  # encoder: ReLU
        else:
            y = jax.nn.sigmoid(y)                    # decoder: Sigmoid (EUP)
        # Dropout layers: eval-mode identity (see TODOs at top of file).

    o_ref[...] = y if o_ref.dtype == jnp.float32 else y.astype(o_ref.dtype)


def autoencoder_forward(x, enc_params, dec_params, *, block_b=None,
                        matmul_dtype=jnp.float32):
    """Fused single-pallas_call forward.

    x: (B, hidden[0]); enc_params/dec_params: lists of (W(in,out), b(1,out))."""
    B, F0 = x.shape
    params = list(enc_params) + list(dec_params)
    n_enc, n_dec = len(enc_params), len(dec_params)
    n_layers = n_enc + n_dec
    assert params[-1][0].shape[1] == F0, "decoder must reconstruct hidden[0]"
    mm_dt = jnp.dtype(matmul_dtype)

    # ---- feature-dim padding to 128 lanes (lane-dense loads/stores, fuller MXU)
    F0_pad = _round_up(F0, _LANE)
    fins_pad = [_round_up(w.shape[0], _LANE) for w, _ in params]
    fouts_pad = [_round_up(w.shape[1], _LANE) for w, _ in params]
    Fmax = max(fouts_pad)

    x_p = x if F0_pad == F0 else jnp.pad(x, ((0, 0), (0, F0_pad - F0)))

    w_padded = []
    b_rows = []
    for (w, b), fi, fo in zip(params, fins_pad, fouts_pad):
        wp = jnp.pad(w, ((0, fi - w.shape[0]), (0, fo - w.shape[1])))
        w_padded.append(wp.astype(mm_dt))            # pre-cast in wrapper
        bv = jnp.reshape(b, (-1,)).astype(jnp.float32)
        b_rows.append(jnp.pad(bv, (0, Fmax - bv.shape[0])))
    biases = jnp.stack(b_rows, axis=0)               # (n_layers, Fmax): one DMA

    # ---- batch tiling
    if block_b is None:
        # Mem-bound regime: big tiles (512 rows ~85% of HBM roofline vs ~29% at
        # 128).  Small batches run as a single tile (avoids per-step overhead).
        Bp8 = _round_up(B, _SUBLANE)
        block_b = Bp8 if Bp8 <= 512 else 512
        # TODO(synk): on v7x with large B, bias the choice toward an even grid
        # length so dimension_semantics=("parallel",) fills both TensorCores.
    block_b = max(_SUBLANE, _round_up(block_b, _SUBLANE))

    pad_b = (-B) % block_b
    if pad_b:
        x_p = jnp.pad(x_p, ((0, pad_b), (0, 0)))
    Bp = B + pad_b

    flat_inputs = [x_p, biases] + w_padded
    in_specs = [
        pl.BlockSpec((block_b, F0_pad), lambda i: (i, 0)),
        pl.BlockSpec((n_layers, Fmax), lambda i: (0, 0)),     # packed biases, resident
    ]
    for wp in w_padded:
        in_specs.append(pl.BlockSpec(wp.shape, lambda i: (0, 0)))  # weights resident

    kernel = functools.partial(
        _fused_ae_kernel, n_enc=n_enc, n_dec=n_dec, matmul_dtype=mm_dt)

    out = pl.pallas_call(
        kernel,
        out_shape=jax.ShapeDtypeStruct((Bp, F0_pad), x.dtype),
        grid=(Bp // block_b,),
        in_specs=in_specs,
        out_specs=pl.BlockSpec((block_b, F0_pad), lambda i: (i, 0)),
        compiler_params=pltpu.CompilerParams(
            # Batch tiles are independent -> shard across v7x's 2 TensorCores.
            dimension_semantics=("parallel",),
        ),
    )(*flat_inputs)
    return out[:B, :F0]


def init_autoencoder_params(key, hidden):
    """Deterministic init mirroring the PyTorch module's layer shapes.

    Returns (enc_params, dec_params), each a list of (W(in,out), b(1,out))."""
    enc_params, dec_params = [], []
    for i in range(len(hidden) - 1):                 # encoder
        key, kw, kb = jax.random.split(key, 3)
        fan_in, fan_out = hidden[i], hidden[i + 1]
        bound = 1.0 / (fan_in ** 0.5)
        w = jax.random.uniform(kw, (fan_in, fan_out), jnp.float32, -bound, bound)
        b = jax.random.uniform(kb, (1, fan_out), jnp.float32, -bound, bound)
        enc_params.append((w, b))
    for i in range(len(hidden) - 1, 0, -1):          # decoder
        key, kw, kb = jax.random.split(key, 3)
        fan_in, fan_out = hidden[i], hidden[i - 1]
        bound = 1.0 / (fan_in ** 0.5)
        w = jax.random.uniform(kw, (fan_in, fan_out), jnp.float32, -bound, bound)
        b = jax.random.uniform(kb, (1, fan_out), jnp.float32, -bound, bound)
        dec_params.append((w, b))
    return enc_params, dec_params


def autoencoder_reference(x, enc_params, dec_params):
    """Plain-JAX reference for correctness checking (eval-mode dropout)."""
    for w, b in enc_params:
        x = jnp.maximum(jnp.dot(x, w) + b, 0.0)
    for w, b in dec_params:
        x = jax.nn.sigmoid(jnp.dot(x, w) + b)
    return x


if __name__ == "__main__":
    hidden = [64, 32, 16]   # AutoEncoder(hidden=[64, 32, 16]), eval mode
    batch = 32

    key = jax.random.PRNGKey(0)
    key, kx = jax.random.split(key)
    x = jax.random.normal(kx, (batch, hidden[0]), dtype=jnp.float32)

    enc_params, dec_params = init_autoencoder_params(key, hidden)

    # Default tiling: one lane-dense (32, 128) tile does the whole forward in a
    # single grid step (no per-step overhead, unmasked stores).
    out = autoencoder_forward(x, enc_params, dec_params)
    out = jax.block_until_ready(out)

    ref = autoencoder_reference(x, enc_params, dec_params)
    assert out.shape == (batch, hidden[0])
    assert jnp.allclose(out, ref, atol=1e-5, rtol=1e-5)

    print("KERNEL_OK")
</pallas_src>

<mosaic_0001>
module attributes {stable_mosaic.version = 11 : i64} {
  func.func @_fused_ae_kernel(%arg0: i32, %arg1: memref<32x128xf32, #tpu.memory_space<vmem>>, %arg2: memref<4x128xf32, #tpu.memory_space<vmem>>, %arg3: memref<128x128xf32, #tpu.memory_space<vmem>>, %arg4: memref<128x128xf32, #tpu.memory_space<vmem>>, %arg5: memref<128x128xf32, #tpu.memory_space<vmem>>, %arg6: memref<128x128xf32, #tpu.memory_space<vmem>>, %arg7: memref<32x128xf32, #tpu.memory_space<vmem>>) attributes {dimension_semantics = [#tpu.dimension_semantics<parallel>], iteration_bounds = array<i64: 1>, scalar_prefetch = 0 : i64, scratch_operands = 0 : i64, tpu.core_type = #tpu.core_type<tc>, window_params = [{transform_indices = @transform_0, window_bounds = array<i64: 32, 128>}, {pipeline_mode = #tpu.pipeline_mode<synchronous>, transform_indices = @transform_1, window_bounds = array<i64: 4, 128>}, {pipeline_mode = #tpu.pipeline_mode<synchronous>, transform_indices = @transform_2, window_bounds = array<i64: 128, 128>}, {pipeline_mode = #tpu.pipeline_mode<synchronous>, transform_indices = @transform_3, window_bounds = array<i64: 128, 128>}, {pipeline_mode = #tpu.pipeline_mode<synchronous>, transform_indices = @transform_4, window_bounds = array<i64: 128, 128>}, {pipeline_mode = #tpu.pipeline_mode<synchronous>, transform_indices = @transform_5, window_bounds = array<i64: 128, 128>}, {transform_indices = @transform_6, window_bounds = array<i64: 32, 128>}]} {
    %c0 = arith.constant 0 : index
    %c0_0 = arith.constant 0 : index
    %0 = vector.load %arg2[%c0, %c0_0] : memref<4x128xf32, #tpu.memory_space<vmem>>, vector<4x128xf32>
    %c0_1 = arith.constant 0 : index
    %c0_2 = arith.constant 0 : index
    %1 = vector.load %arg1[%c0_1, %c0_2] : memref<32x128xf32, #tpu.memory_space<vmem>>, vector<32x128xf32>
    %c0_3 = arith.constant 0 : index
    %c0_4 = arith.constant 0 : index
    %2 = vector.load %arg3[%c0_3, %c0_4] : memref<128x128xf32, #tpu.memory_space<vmem>>, vector<128x128xf32>
    %cst = arith.constant dense<0.000000e+00> : vector<32x128xf32>
    %3 = tpu.matmul %1, %2, %cst {dimension_numbers = #tpu.dot_dimension_numbers<[1], [0], [0], [1], [0, 0, 1, 1], [], []>} : vector<32x128xf32>, vector<128x128xf32>, vector<32x128xf32> -> vector<32x128xf32>
    %4 = vector.extract_strided_slice %0 {offsets = [0, 0], sizes = [1, 128], strides = [1, 1]} : vector<4x128xf32> to vector<1x128xf32>
    %5 = vector.broadcast %4 : vector<1x128xf32> to vector<32x128xf32>
    %6 = arith.addf %3, %5 : vector<32x128xf32>
    %cst_5 = arith.constant 0.000000e+00 : f32
    %7 = vector.broadcast %cst_5 : f32 to vector<32x128xf32>
    %8 = arith.maximumf %6, %7 : vector<32x128xf32>
    %c0_6 = arith.constant 0 : index
    %c0_7 = arith.constant 0 : index
    %9 = vector.load %arg4[%c0_6, %c0_7] : memref<128x128xf32, #tpu.memory_space<vmem>>, vector<128x128xf32>
    %cst_8 = arith.constant dense<0.000000e+00> : vector<32x128xf32>
    %10 = tpu.matmul %8, %9, %cst_8 {dimension_numbers = #tpu.dot_dimension_numbers<[1], [0], [0], [1], [0, 0, 1, 1], [], []>} : vector<32x128xf32>, vector<128x128xf32>, vector<32x128xf32> -> vector<32x128xf32>
    %11 = vector.extract_strided_slice %0 {offsets = [1, 0], sizes = [1, 128], strides = [1, 1]} : vector<4x128xf32> to vector<1x128xf32>
    %12 = vector.broadcast %11 : vector<1x128xf32> to vector<32x128xf32>
    %13 = arith.addf %10, %12 : vector<32x128xf32>
    %cst_9 = arith.constant 0.000000e+00 : f32
    %14 = vector.broadcast %cst_9 : f32 to vector<32x128xf32>
    %15 = arith.maximumf %13, %14 : vector<32x128xf32>
    %c0_10 = arith.constant 0 : index
    %c0_11 = arith.constant 0 : index
    %16 = vector.load %arg5[%c0_10, %c0_11] : memref<128x128xf32, #tpu.memory_space<vmem>>, vector<128x128xf32>
    %cst_12 = arith.constant dense<0.000000e+00> : vector<32x128xf32>
    %17 = tpu.matmul %15, %16, %cst_12 {dimension_numbers = #tpu.dot_dimension_numbers<[1], [0], [0], [1], [0, 0, 1, 1], [], []>} : vector<32x128xf32>, vector<128x128xf32>, vector<32x128xf32> -> vector<32x128xf32>
    %18 = vector.extract_strided_slice %0 {offsets = [2, 0], sizes = [1, 128], strides = [1, 1]} : vector<4x128xf32> to vector<1x128xf32>
    %19 = vector.broadcast %18 : vector<1x128xf32> to vector<32x128xf32>
    %20 = arith.addf %17, %19 : vector<32x128xf32>
    %21 = arith.negf %20 : vector<32x128xf32>
    %22 = math.exp %21 : vector<32x128xf32>
    %cst_13 = arith.constant 1.000000e+00 : f32
    %23 = vector.broadcast %cst_13 : f32 to vector<32x128xf32>
    %24 = arith.addf %23, %22 : vector<32x128xf32>
    %25 = arith.divf %23, %24 : vector<32x128xf32>
    %c0_14 = arith.constant 0 : index
    %c0_15 = arith.constant 0 : index
    %26 = vector.load %arg6[%c0_14, %c0_15] : memref<128x128xf32, #tpu.memory_space<vmem>>, vector<128x128xf32>
    %cst_16 = arith.constant dense<0.000000e+00> : vector<32x128xf32>
    %27 = tpu.matmul %25, %26, %cst_16 {dimension_numbers = #tpu.dot_dimension_numbers<[1], [0], [0], [1], [0, 0, 1, 1], [], []>} : vector<32x128xf32>, vector<128x128xf32>, vector<32x128xf32> -> vector<32x128xf32>
    %28 = vector.extract_strided_slice %0 {offsets = [3, 0], sizes = [1, 128], strides = [1, 1]} : vector<4x128xf32> to vector<1x128xf32>
    %29 = vector.broadcast %28 : vector<1x128xf32> to vector<32x128xf32>
    %30 = arith.addf %27, %29 : vector<32x128xf32>
    %31 = arith.negf %30 : vector<32x128xf32>
    %32 = math.exp %31 : vector<32x128xf32>
    %cst_17 = arith.constant 1.000000e+00 : f32
    %33 = vector.broadcast %cst_17 : f32 to vector<32x128xf32>
    %34 = arith.addf %33, %32 : vector<32x128xf32>
    %35 = arith.divf %33, %34 : vector<32x128xf32>
    %c0_18 = arith.constant 0 : index
    %c0_19 = arith.constant 0 : index
    %36 = vector.load %arg7[%c0_18, %c0_19] : memref<32x128xf32, #tpu.memory_space<vmem>>, vector<32x128xf32>
    tpu.vector_store %arg7[%c0_18, %c0_19], %35 {strides = array<i32>} : memref<32x128xf32, #tpu.memory_space<vmem>>, vector<32x128xf32>,
    return
  }
  func.func @transform_0(%arg0: i32) -> (i32, i32) {
    %c0_i32 = arith.constant 0 : i32
    %c0_i32_0 = arith.constant 0 : i32
    return %arg0, %c0_i32 : i32, i32
  }
  func.func @transform_1(%arg0: i32) -> (i32, i32) {
    %c0_i32 = arith.constant 0 : i32
    %c0_i32_0 = arith.constant 0 : i32
    %c0_i32_1 = arith.constant 0 : i32
    return %c0_i32, %c0_i32_0 : i32, i32
  }
  func.func @transform_2(%arg0: i32) -> (i32, i32) {
    %c0_i32 = arith.constant 0 : i32
    %c0_i32_0 = arith.constant 0 : i32
    %c0_i32_1 = arith.constant 0 : i32
    return %c0_i32, %c0_i32_0 : i32, i32
  }
  func.func @transform_3(%arg0: i32) -> (i32, i32) {
    %c0_i32 = arith.constant 0 : i32
    %c0_i32_0 = arith.constant 0 : i32
    %c0_i32_1 = arith.constant 0 : i32
    return %c0_i32, %c0_i32_0 : i32, i32
  }
  func.func @transform_4(%arg0: i32) -> (i32, i32) {
    %c0_i32 = arith.constant 0 : i32
    %c0_i32_0 = arith.constant 0 : i32
    %c0_i32_1 = arith.constant 0 : i32
    return %c0_i32, %c0_i32_0 : i32, i32
  }
  func.func @transform_5(%arg0: i32) -> (i32, i32) {
    %c0_i32 = arith.constant 0 : i32
    %c0_i32_0 = arith.constant 0 : i32
    %c0_i32_1 = arith.constant 0 : i32
    return %c0_i32, %c0_i32_0 : i32, i32
  }
  func.func @transform_6(%arg0: i32) -> (i32, i32) {
    %c0_i32 = arith.constant 0 : i32
    %c0_i32_0 = arith.constant 0 : i32
    return %arg0, %c0_i32 : i32, i32
  }
}

</mosaic_0001>

<bundles_post_ra>
// kernel: tpu_custom_call.1
= control target key start
LH: loop header
LB: loop body
LE: loop exit
PB: predicated region body
PF: predicated region fallthrough
CT: control target
= control target key end

     0   :  { %11 = vsyncpa [#allocation3], 0  ;;  %s807_s0 = inlined_call_operand.hbm [shape: f32[32,128], index: 0, kind: input, shape index: {}]   ;;  %s808_s1 = inlined_call_operand.hbm [shape: f32[4,128], index: 1, kind: input, shape index: {}]   ;;  %s809_s2 = inlined_call_operand.hbm [shape: f32[128,128], index: 2, kind: input, shape index: {}]   ;;  %s810_s3 = inlined_call_operand.hbm [shape: f32[128,128], index: 3, kind: input, shape index: {}]   ;;  %s811_s4 = inlined_call_operand.hbm [shape: f32[128,128], index: 4, kind: input, shape index: {}]   ;;  %s812_s5 = inlined_call_operand.hbm [shape: f32[128,128], index: 5, kind: input, shape index: {}]   ;;  %s813_s6 = inlined_call_operand.hbm [shape: f32[32,128], index: 6, kind: output, shape index: {}]  }
   0x1   :  { %12 = vsyncpa [#allocation6], 0 }
   0x2   :  { %13 = vsyncpa [#allocation9], 0 }
   0x3   :  { %14 = vsyncpa [#allocation12], 0  ;;  %s34_s23 = sshll.u32 %s808_s1, 4  ;;  %s35_s23 = int_to_ptr.hbm [resolvable:$true] %s34_s23 }
   0x4   :  { %15 = vsyncpa [#allocation4], 0  ;;  %s718_s24 = smov [#allocation5]   ;;  %s57_s28 = sshll.u32 %s810_s3, 4  ;;  %s58_s28 = int_to_ptr.hbm [resolvable:$true] %s57_s28 }
   0x5   :  { %s36_s25 = sshll.u32 %s718_s24, 4  ;;  %s719_s29 = smov [#allocation8]   ;;  %s37_s25 = int_to_ptr.vmem [resolvable:$true] %s36_s25 }
   0x6   :  { %39 = dma.hbm_to_vmem [thread:$0]  %s35_s23, 64, %s37_s25, [#allocation6]  }
   0x7   :  { %s59_s30 = sshll.u32 %s719_s29, 4  ;;  %s20_s9 = sshll.u32 %s807_s0, 4  ;;  %s60_s30 = int_to_ptr.vmem [resolvable:$true] %s59_s30  ;;  %s21_s9 = int_to_ptr.hbm [resolvable:$true] %s20_s9 }
   0x8   :  { %s720_s1 = smov 128   ;;  %s721_s10 = smov 8  }
   0x9   :  { %65 = dma.hbm_to_vmem [thread:$0]  %s58_s28, 2048, %s60_s30, [#allocation9], %s720_s1, %s720_s1, %s721_s10  }
   0xa   :  { %s44_s13 = sshll.u32 %s809_s2, 4  ;;  %s722_s3 = smov [#allocation2]   ;;  %s45_s13 = int_to_ptr.hbm [resolvable:$true] %s44_s13 }
   0xb   :  { %s22_s14 = sshll.u32 %s722_s3, 4  ;;  %s723_s0 = smov [#allocation7]   ;;  %s23_s14 = int_to_ptr.vmem [resolvable:$true] %s22_s14 }
   0xc   :  { %28 = dma.hbm_to_vmem [thread:$0]  %s21_s9, 512, %s23_s14, [#allocation3], %s720_s1, %s720_s1, %s721_s10  }
   0xd   :  { %s46_s15 = sshll.u32 %s723_s0, 4  ;;  %s70_s18 = sshll.u32 %s811_s4, 4  ;;  %s47_s15 = int_to_ptr.vmem [resolvable:$true] %s46_s15  ;;  %s71_s18 = int_to_ptr.hbm [resolvable:$true] %s70_s18 }
   0xe   :  { %52 = dma.hbm_to_vmem [thread:$0]  %s45_s13, 2048, %s47_s15, [#allocation6], %s720_s1, %s720_s1, %s721_s10  }
   0xf   :  { %s83_s20 = sshll.u32 %s812_s5, 4  ;;  %s724_s21 = smov [#allocation10]   ;;  %s84_s20 = int_to_ptr.hbm [resolvable:$true] %s83_s20 }
  0x10   :  { %s72_s22 = sshll.u32 %s724_s21, 4  ;;  %s725_s23 = smov [#allocation11]   ;;  %s73_s22 = int_to_ptr.vmem [resolvable:$true] %s72_s22 }
  0x11   :  { %78 = dma.hbm_to_vmem [thread:$0]  %s71_s18, 2048, %s73_s22, [#allocation9], %s720_s1, %s720_s1, %s721_s10  }
  0x12   :  { %s85_s4 = sshll.u32 %s725_s23, 4  ;;  %s86_s4 = int_to_ptr.vmem [resolvable:$true] %s85_s4 }
  0x13   :  { %91 = dma.hbm_to_vmem [thread:$0]  %s84_s20, 2048, %s86_s4, [#allocation12], %s720_s1, %s720_s1, %s721_s10  }
  0x14   :  { %708 = dma.done.wait [#allocation3], 512  }
  0x15   :  { %709 = vsyncadd [#allocation3], 4294966784 }
  0x16   :  { %710 = dma.done.wait [#allocation6], 2112  }
  0x17   :  { %711 = vsyncadd [#allocation6], 4294965184 }
  0x18   :  { %712 = dma.done.wait [#allocation9], 4096  }
  0x19   :  { %713 = vsyncadd [#allocation9], 4294963200 }
  0x1a   :  { %714 = dma.done.wait [#allocation12], 2048  }
  0x1b   :  { %715 = vsyncadd [#allocation12], 4294965248  ;;  %v136_v0 = vld [vmem:[#allocation7 + $0x78] sm:$0xff]  ;;  %v135_v1 = vld [vmem:[#allocation7 + $0x70] sm:$0xff]  ;;  %s726_s5 = smov [#allocation13]   ;;  %s475_s27 = sshll.u32 %s813_s6, 4  ;;  %s476_s27 = int_to_ptr.hbm [resolvable:$true] %s475_s27 }
  0x1c   :  { %138 = vmatpush.msra.mxu0 %v136_v0  ;;  %v134_v2 = vld [vmem:[#allocation7 + $0x68] sm:$0xff]  ;;  %v133_v3 = vld [vmem:[#allocation7 + $0x60] sm:$0xff]  ;;  %v132_v4 = vld [vmem:[#allocation7 + $0x58] sm:$0xff]  ;;  %s473_s24 = sshll.u32 %s726_s5, 4  ;;  %s474_s24 = int_to_ptr.vmem [resolvable:$true] %s473_s24 }
  0x1d   :  { %v131_v5 = vld [vmem:[#allocation7 + $0x50] sm:$0xff]  ;;  %v130_v6 = vld [vmem:[#allocation7 + $0x48] sm:$0xff]  ;;  %v129_v7 = vld [vmem:[#allocation7 + $0x40] sm:$0xff] }
  0x1e   :  { %139 = vmatpush.msra.mxu0 %v135_v1  ;;  %v128_v8 = vld [vmem:[#allocation7 + $0x38] sm:$0xff]  ;;  %v127_v9 = vld [vmem:[#allocation7 + $0x30] sm:$0xff]  ;;  %v126_v10 = vld [vmem:[#allocation7 + $0x28] sm:$0xff] }
  0x1f   :  { %v125_v11 = vld [vmem:[#allocation7 + $0x20] sm:$0xff]  ;;  %v124_v12 = vld [vmem:[#allocation7 + $0x18] sm:$0xff]  ;;  %v123_v13 = vld [vmem:[#allocation7 + $0x10] sm:$0xff] }
  0x20   :  { %140 = vmatpush.msra.mxu0 %v134_v2  ;;  %v186_v14 = vld [vmem:[#allocation8 + $0x78] sm:$0xff]  ;;  %v185_v15 = vld [vmem:[#allocation8 + $0x70] sm:$0xff]  ;;  %v122_v16 = vld [vmem:[#allocation7 + $0x8] sm:$0xff] }
  0x21   :  { %188 = vmatpush.msra.mxu1 %v186_v14  ;;  %v184_v17 = vld [vmem:[#allocation8 + $0x68] sm:$0xff]  ;;  %v121_v18 = vld [vmem:[#allocation7] sm:$0xff]  ;;  %v182_v21 = vld [vmem:[#allocation8 + $0x58] sm:$0xff] }
  0x22   :  { %141 = vmatpush.msra.mxu0 %v133_v3  ;;  %v183_v19 = vld [vmem:[#allocation8 + $0x60] sm:$0xff]  ;;  %v181_v22 = vld [vmem:[#allocation8 + $0x50] sm:$0xff]  ;;  %v180_v23 = vld [vmem:[#allocation8 + $0x48] sm:$0xff] }
  0x23   :  { %189 = vmatpush.msra.mxu1 %v185_v15  ;;  %v117_v20 = vld [vmem:[#allocation2] sm:$0xff]  ;;  %v118_v25 = vld [vmem:[#allocation2 + $0x8] sm:$0xff]  ;;  %v177_v27 = vld [vmem:[#allocation8 + $0x30] sm:$0xff] }
  0x24   :  { %142 = vmatpush.msra.mxu0 %v132_v4  ;;  %v179_v24 = vld [vmem:[#allocation8 + $0x40] sm:$0xff]  ;;  %v178_v26 = vld [vmem:[#allocation8 + $0x38] sm:$0xff]  ;;  %v176_v28 = vld [vmem:[#allocation8 + $0x28] sm:$0xff] }
  0x25   :  { %190 = vmatpush.msra.mxu1 %v184_v17  ;;  %v175_v29 = vld [vmem:[#allocation8 + $0x20] sm:$0xff]  ;;  %v119_v30 = vld [vmem:[#allocation2 + $0x10] sm:$0xff]  ;;  %v174_v31 = vld [vmem:[#allocation8 + $0x18] sm:$0xff] }
  0x26   :  { %143 = vmatpush.msra.mxu0 %v131_v5  ;;  %v120_v32 = vld [vmem:[#allocation2 + $0x18] sm:$0xff]  ;;  %v172_v34 = vld [vmem:[#allocation8 + $0x8] sm:$0xff]  ;;  %v171_v35 = vld [vmem:[#allocation8] sm:$0xff] }
  0x27   :  { %191 = vmatpush.msra.mxu1 %v183_v19  ;;  %v173_v33 = vld [vmem:[#allocation8 + $0x10] sm:$0xff]  ;;  %v795_v36 = vld [vmem:[#allocation5] sm:$0xf]  ;;  %v234_v40 = vld [vmem:[#allocation10 + $0x68] sm:$0xff] }
  0x28   :  { %144 = vmatpush.msra.mxu0 %v130_v6  ;;  %v137_v37 = vperm.slane %v795_v36, 0  ;;  %v236_v38 = vld [vmem:[#allocation10 + $0x78] sm:$0xff]  ;;  %v235_v39 = vld [vmem:[#allocation10 + $0x70] sm:$0xff]  ;;  %v233_v43 = vld [vmem:[#allocation10 + $0x60] sm:$0xff]  ;;  %v187_v2 = vperm.slane %v795_v36, 1 }
  0x29   :  { %192 = vmatpush.msra.mxu1 %v182_v21  ;;  %238 = vmatpush.msra.mxu2 %v236_v38  ;;  %v232_v45 = vld [vmem:[#allocation10 + $0x58] sm:$0xff]  ;;  %v231_v46 = vld [vmem:[#allocation10 + $0x50] sm:$0xff]  ;;  %v230_v47 = vld [vmem:[#allocation10 + $0x48] sm:$0xff] }
  0x2a   :  { %145 = vmatpush.msra.mxu0 %v129_v7  ;;  %v229_v50 = vld [vmem:[#allocation10 + $0x40] sm:$0xff]  ;;  %v228_v52 = vld [vmem:[#allocation10 + $0x38] sm:$0xff]  ;;  %v227_v53 = vld [vmem:[#allocation10 + $0x30] sm:$0xff] }
  0x2b   :  { %193 = vmatpush.msra.mxu1 %v181_v22  ;;  %239 = vmatpush.msra.mxu2 %v235_v39  ;;  %v226_v54 = vld [vmem:[#allocation10 + $0x28] sm:$0xff]  ;;  %v225_v57 = vld [vmem:[#allocation10 + $0x20] sm:$0xff]  ;;  %v224_v59 = vld [vmem:[#allocation10 + $0x18] sm:$0xff] }
  0x2c   :  { %146 = vmatpush.msra.mxu0 %v128_v8  ;;  %v223_v63 = vld [vmem:[#allocation10 + $0x10] sm:$0xff]  ;;  %v222_v0 = vld [vmem:[#allocation10 + $0x8] sm:$0xff]  ;;  %v221_v1 = vld [vmem:[#allocation10] sm:$0xff] }
  0x2d   :  { %194 = vmatpush.msra.mxu1 %v180_v23  ;;  %240 = vmatpush.msra.mxu2 %v234_v40  ;;  %v358_v15 = vld [vmem:[#allocation11 + $0x78] sm:$0xff]  ;;  %v356_v17 = vld [vmem:[#allocation11 + $0x68] sm:$0xff]  ;;  %v351_v22 = vld [vmem:[#allocation11 + $0x40] sm:$0xff] }
  0x2e   :  { %147 = vmatpush.msra.mxu0 %v127_v9  ;;  %360 = vmatpush.msra.mxu3 %v358_v15  ;;  %v354_v19 = vld [vmem:[#allocation11 + $0x58] sm:$0xff]  ;;  %v352_v21 = vld [vmem:[#allocation11 + $0x48] sm:$0xff] }
  0x2f   :  { %195 = vmatpush.msra.mxu1 %v179_v24  ;;  %241 = vmatpush.msra.mxu2 %v233_v43  ;;  %v350_v23 = vld [vmem:[#allocation11 + $0x38] sm:$0xff]  ;;  %v349_v24 = vld [vmem:[#allocation11 + $0x30] sm:$0xff] }
  0x30   :  { %148 = vmatpush.msra.mxu0 %v126_v10 }
  0x31   :  { %196 = vmatpush.msra.mxu1 %v178_v26  ;;  %242 = vmatpush.msra.mxu2 %v232_v45  ;;  %v347_v26 = vld [vmem:[#allocation11 + $0x20] sm:$0xff] }
  0x32   :  { %149 = vmatpush.msra.mxu0 %v125_v11 }
  0x33   :  { %197 = vmatpush.msra.mxu1 %v177_v27  ;;  %243 = vmatpush.msra.mxu2 %v231_v46  ;;  %v346_v27 = vld [vmem:[#allocation11 + $0x18] sm:$0xff] }
  0x34   :  { %150 = vmatpush.msra.mxu0 %v124_v12 }
  0x35   :  { %198 = vmatpush.msra.mxu1 %v176_v28  ;;  %244 = vmatpush.msra.mxu2 %v230_v47  ;;  %v345_v28 = vld [vmem:[#allocation11 + $0x10] sm:$0xff] }
  0x36   :  { %151 = vmatpush.msra.mxu0 %v123_v13 }
  0x37   :  { %199 = vmatpush.msra.mxu1 %v175_v29  ;;  %245 = vmatpush.msra.mxu2 %v229_v50  ;;  %v344_v29 = vld [vmem:[#allocation11 + $0x8] sm:$0xff] }
  0x38   :  { %152 = vmatpush.msra.mxu0 %v122_v16  ;;  %v357_v16 = vld [vmem:[#allocation11 + $0x70] sm:$0xff] }
  0x39   :  { %200 = vmatpush.msra.mxu1 %v174_v31  ;;  %246 = vmatpush.msra.mxu2 %v228_v52  ;;  %v343_v31 = vld [vmem:[#allocation11] sm:$0xff] }
  0x3a   :  { %153 = vmatpush.msra.mxu0 %v121_v18  ;;  %361 = vmatpush.msra.mxu3 %v357_v16  ;;  %v355_v18 = vld [vmem:[#allocation11 + $0x60] sm:$0xff] }
  0x3b   :  { %154 = vmatmul.f32.vlgmr.msra.gmra.mxu0 %v117_v20  ;;  %201 = vmatpush.msra.mxu1 %v173_v33  ;;  %v353_v20 = vld [vmem:[#allocation11 + $0x50] sm:$0xff] }
  0x3c   :  { %247 = vmatpush.msra.mxu2 %v227_v53  ;;  %362 = vmatpush.msra.mxu3 %v356_v17 }
  0x3d   :  { %202 = vmatpush.msra.mxu1 %v172_v34 }
  0x3e   :  { %248 = vmatpush.msra.mxu2 %v226_v54  ;;  %363 = vmatpush.msra.mxu3 %v355_v18 }
  0x3f   :  { %203 = vmatpush.msra.mxu1 %v171_v35 }
  0x40   :  { %249 = vmatpush.msra.mxu2 %v225_v57  ;;  %364 = vmatpush.msra.mxu3 %v354_v19 }
  0x42   :  { %250 = vmatpush.msra.mxu2 %v224_v59  ;;  %365 = vmatpush.msra.mxu3 %v353_v20 }
  0x43   :  { %157 = vmatmul.f32.gmra.mxu0 %v118_v25  ;;  %v348_v25 = vld [vmem:[#allocation11 + $0x28] sm:$0xff] }
  0x44   :  { %251 = vmatpush.msra.mxu2 %v223_v63  ;;  %366 = vmatpush.msra.mxu3 %v352_v21 }
  0x46   :  { %252 = vmatpush.msra.mxu2 %v222_v0  ;;  %367 = vmatpush.msra.mxu3 %v351_v22 }
  0x48   :  { %253 = vmatpush.msra.mxu2 %v221_v1  ;;  %368 = vmatpush.msra.mxu3 %v350_v23 }
  0x4a   :  { %369 = vmatpush.msra.mxu3 %v349_v24 }
  0x4b   :  { %160 = vmatmul.f32.gmra.mxu0 %v119_v30  ;;  %v237_v30 = vperm.slane %v795_v36, 2 }
  0x4c   :  { %370 = vmatpush.msra.mxu3 %v348_v25 }
  0x4e   :  { %371 = vmatpush.msra.mxu3 %v347_v26 }
  0x50   :  { %372 = vmatpush.msra.mxu3 %v346_v27 }
  0x52   :  { %373 = vmatpush.msra.mxu3 %v345_v28 }
  0x53   :  { %163 = vmatmul.f32.gmra.mxu0 %v120_v32 }
  0x54   :  { %374 = vmatpush.msra.mxu3 %v344_v29  ;;  %v359_v29 = vperm.slane %v795_v36, 3 }
  0x56   :  { %375 = vmatpush.msra.mxu3 %v343_v31 }
  0xb8   :  { %v155_v41 = vpop.f32.mrf.mxu0 }
  0xb9   :  { %v156_v42 = vadd.f32 %v155_v41, %v137_v37 }
  0xbb   :  { %v167_v44 = vmax.f32 %v156_v42, 0.0 }
  0xbd   :  { %204 = vmatmul.f32.vlgmr.msra.gmra.mxu1 %v167_v44 }
  0xc0   :  { %v158_v48 = vpop.f32.mrf.mxu0 }
  0xc1   :  { %v159_v49 = vadd.f32 %v158_v48, %v137_v37 }
  0xc3   :  { %v168_v51 = vmax.f32 %v159_v49, 0.0 }
  0xc5   :  { %207 = vmatmul.f32.gmra.mxu1 %v168_v51 }
  0xc8   :  { %v161_v55 = vpop.f32.mrf.mxu0 }
  0xc9   :  { %v162_v56 = vadd.f32 %v161_v55, %v137_v37 }
  0xcb   :  { %v169_v58 = vmax.f32 %v162_v56, 0.0 }
  0xcd   :  { %210 = vmatmul.f32.gmra.mxu1 %v169_v58 }
  0xd0   :  { %v164_v60 = vpop.f32.mrf.mxu0 }
  0xd1   :  { %v165_v61 = vadd.f32 %v164_v60, %v137_v37 }
  0xd3   :  { %v170_v62 = vmax.f32 %v165_v61, 0.0 }
  0xd5   :  { %213 = vmatmul.f32.gmra.mxu1 %v170_v62 }
 0x13a   :  { %v205_v3 = vpop.f32.mrf.mxu1 }
 0x13b   :  { %v206_v4 = vadd.f32 %v205_v3, %v187_v2 }
 0x13d   :  { %v217_v5 = vmax.f32 %v206_v4, 0.0 }
 0x13f   :  { %254 = vmatmul.f32.vlgmr.msra.gmra.mxu2 %v217_v5 }
 0x142   :  { %v208_v6 = vpop.f32.mrf.mxu1 }
 0x143   :  { %v209_v7 = vadd.f32 %v208_v6, %v187_v2 }
 0x145   :  { %v218_v8 = vmax.f32 %v209_v7, 0.0 }
 0x147   :  { %257 = vmatmul.f32.gmra.mxu2 %v218_v8 }
 0x14a   :  { %v211_v9 = vpop.f32.mrf.mxu1 }
 0x14b   :  { %v212_v10 = vadd.f32 %v211_v9, %v187_v2 }
 0x14d   :  { %v219_v11 = vmax.f32 %v212_v10, 0.0 }
 0x14f   :  { %260 = vmatmul.f32.gmra.mxu2 %v219_v11 }
 0x152   :  { %v214_v12 = vpop.f32.mrf.mxu1 }
 0x153   :  { %v215_v13 = vadd.f32 %v214_v12, %v187_v2 }
 0x155   :  { %v220_v14 = vmax.f32 %v215_v13, 0.0 }
 0x157   :  { %263 = vmatmul.f32.gmra.mxu2 %v220_v14 }
 0x1c2   :  { %v255_v32 = vpop.f32.mrf.mxu2 }
 0x1c3   :  { %v256_v33 = vadd.f32 %v255_v32, %v237_v30 }
 0x1c5   :  { %v491_v34 = vmul.f32 -1.442695, %v256_v33 }
 0x1c7   :  { %508 = vpow2.f32 %v491_v34 }
 0x1ca   :  { %v258_v35 = vpop.f32.mrf.mxu2 }
 0x1cb   :  { %v259_v37 = vadd.f32 %v258_v35, %v237_v30 }
 0x1cd   :  { %v509_v38 = vpop.eup %508  ;;  %v492_v39 = vmul.f32 -1.442695, %v259_v37 }
 0x1ce   :  { %v279_v40 = vadd.f32 1.0, %v509_v38 }
 0x1cf   :  { %510 = vpow2.f32 %v492_v39 }
 0x1d0   :  { %512 = vrcp.f32 %v279_v40  ;;  %v294_v50 = vand.u32 2147483648, %v279_v40  ;;  %v292_v53 = vand.u32 2147483647, %v279_v40  ;;  %vm288_vm1 = vweird.f32 %v279_v40 }
 0x1d2   :  { %v261_v41 = vpop.f32.mrf.mxu2  ;;  %v295_v59 = vor.u32 1.1754944e-38, %v294_v50  ;;  %vm293_vm3 = vcmp.eq.f32.partialorder %v292_v53, 8.507059e+37 }
 0x1d3   :  { %v262_v42 = vadd.f32 %v261_v41, %v237_v30 }
 0x1d5   :  { %v511_v43 = vpop.eup %510  ;;  %v493_v44 = vmul.f32 -1.442695, %v262_v42 }
 0x1d6   :  { %v513_v45 = vpop.eup %512  ;;  %v280_v46 = vadd.f32 1.0, %v511_v43 }
 0x1d7   :  { %514 = vpow2.f32 %v493_v44  ;;  %v284_v47 = vmul.f32 %v513_v45, %v279_v40  ;;  %vm289_vm0 = vweird.f32 %v513_v45 }
 0x1d8   :  { %516 = vrcp.f32 %v280_v46  ;;  %vm290_vm2 = vmor %vm288_vm1, %vm289_vm0  ;;  %v309_v0 = vand.u32 2147483648, %v280_v46  ;;  %v307_v2 = vand.u32 2147483647, %v280_v46  ;;  %vm303_vm5 = vweird.f32 %v280_v46 }
 0x1d9   :  { %v285_v48 = vsub.f32 1.0, %v284_v47 }
 0x1da   :  { %v264_v49 = vpop.f32.mrf.mxu2  ;;  %v310_v7 = vor.u32 1.1754944e-38, %v309_v0  ;;  %vm308_vm7 = vcmp.eq.f32.partialorder %v307_v2, 8.507059e+37 }
 0x1db   :  { %v265_v51 = vadd.f32 %v264_v49, %v237_v30  ;;  %v286_v52 = vmul.f32 %v513_v45, %v285_v48 }
 0x1dd   :  { %v515_v54 = vpop.eup %514  ;;  %v494_v55 = vmul.f32 -1.442695, %v265_v51  ;;  %v287_v56 = vadd.f32 %v513_v45, %v286_v52 }
 0x1de   :  { %v517_v57 = vpop.eup %516  ;;  %v281_v58 = vadd.f32 1.0, %v515_v54 }
 0x1df   :  { %518 = vpow2.f32 %v494_v55  ;;  %v291_v60 = vsel %vm290_vm2, %v513_v45, %v287_v56  ;;  %v299_v61 = vmul.f32 %v517_v57, %v280_v46  ;;  %vm304_vm4 = vweird.f32 %v517_v57 }
 0x1e0   :  { %520 = vrcp.f32 %v281_v58  ;;  %v296_v62 = vsel %vm293_vm3, %v295_v59, %v291_v60  ;;  %vm305_vm6 = vmor %vm303_vm5, %vm304_vm4  ;;  %v324_v12 = vand.u32 2147483648, %v281_v58  ;;  %v322_v14 = vand.u32 2147483647, %v281_v58 }
 0x1e1   :  { %376 = vmatmul.f32.vlgmr.msra.gmra.mxu3 %v296_v62  ;;  %v300_v63 = vsub.f32 1.0, %v299_v61  ;;  %vm318_vm9 = vweird.f32 %v281_v58 }
 0x1e2   :  { %v325_v17 = vor.u32 1.1754944e-38, %v324_v12  ;;  %vm323_vm11 = vcmp.eq.f32.partialorder %v322_v14, 8.507059e+37 }
 0x1e3   :  { %v301_v1 = vmul.f32 %v517_v57, %v300_v63 }
 0x1e5   :  { %v519_v3 = vpop.eup %518  ;;  %v302_v4 = vadd.f32 %v517_v57, %v301_v1 }
 0x1e6   :  { %v521_v5 = vpop.eup %520  ;;  %v282_v6 = vadd.f32 1.0, %v519_v3 }
 0x1e7   :  { %v306_v8 = vsel %vm305_vm6, %v517_v57, %v302_v4  ;;  %v314_v9 = vmul.f32 %v521_v5, %v281_v58  ;;  %vm319_vm8 = vweird.f32 %v521_v5 }
 0x1e8   :  { %522 = vrcp.f32 %v282_v6  ;;  %v311_v10 = vsel %vm308_vm7, %v310_v7, %v306_v8  ;;  %vm320_vm10 = vmor %vm318_vm9, %vm319_vm8  ;;  %v339_v22 = vand.u32 2147483648, %v282_v6  ;;  %v337_v24 = vand.u32 2147483647, %v282_v6 }
 0x1e9   :  { %379 = vmatmul.f32.gmra.mxu3 %v311_v10  ;;  %v315_v11 = vsub.f32 1.0, %v314_v9  ;;  %vm333_vm13 = vweird.f32 %v282_v6 }
 0x1ea   :  { %v340_v26 = vor.u32 1.1754944e-38, %v339_v22  ;;  %vm338_vm15 = vcmp.eq.f32.partialorder %v337_v24, 8.507059e+37 }
 0x1eb   :  { %v316_v13 = vmul.f32 %v521_v5, %v315_v11 }
 0x1ed   :  { %v317_v15 = vadd.f32 %v521_v5, %v316_v13 }
 0x1ee   :  { %v523_v16 = vpop.eup %522 }
 0x1ef   :  { %v321_v18 = vsel %vm320_vm10, %v521_v5, %v317_v15  ;;  %v329_v19 = vmul.f32 %v523_v16, %v282_v6  ;;  %vm334_vm12 = vweird.f32 %v523_v16 }
 0x1f0   :  { %v326_v20 = vsel %vm323_vm11, %v325_v17, %v321_v18  ;;  %vm335_vm14 = vmor %vm333_vm13, %vm334_vm12 }
 0x1f1   :  { %382 = vmatmul.f32.gmra.mxu3 %v326_v20  ;;  %v330_v21 = vsub.f32 1.0, %v329_v19 }
 0x1f3   :  { %v331_v23 = vmul.f32 %v523_v16, %v330_v21 }
 0x1f5   :  { %v332_v25 = vadd.f32 %v523_v16, %v331_v23 }
 0x1f7   :  { %v336_v27 = vsel %vm335_vm14, %v523_v16, %v332_v25 }
 0x1f8   :  { %v341_v28 = vsel %vm338_vm15, %v340_v26, %v336_v27 }
 0x1f9   :  { %385 = vmatmul.f32.gmra.mxu3 %v341_v28 }
 0x264   :  { %v377_v30 = vpop.f32.mrf.mxu3 }
 0x265   :  { %v378_v31 = vadd.f32 %v377_v30, %v359_v29 }
 0x267   :  { %v495_v32 = vmul.f32 -1.442695, %v378_v31 }
 0x269   :  { %524 = vpow2.f32 %v495_v32 }
 0x26c   :  { %v380_v33 = vpop.f32.mrf.mxu3 }
 0x26d   :  { %v381_v34 = vadd.f32 %v380_v33, %v359_v29 }
 0x26f   :  { %v525_v35 = vpop.eup %524  ;;  %v496_v37 = vmul.f32 -1.442695, %v381_v34 }
 0x270   :  { %v401_v38 = vadd.f32 1.0, %v525_v35 }
 0x271   :  { %526 = vpow2.f32 %v496_v37 }
 0x272   :  { %528 = vrcp.f32 %v401_v38  ;;  %v416_v46 = vand.u32 2147483648, %v401_v38  ;;  %v414_v50 = vand.u32 2147483647, %v401_v38  ;;  %vm410_vm1 = vweird.f32 %v401_v38 }
 0x274   :  { %v383_v39 = vpop.f32.mrf.mxu3  ;;  %v417_v55 = vor.u32 1.1754944e-38, %v416_v46  ;;  %vm415_vm3 = vcmp.eq.f32.partialorder %v414_v50, 8.507059e+37 }
 0x275   :  { %v384_v40 = vadd.f32 %v383_v39, %v359_v29 }
 0x277   :  { %v527_v41 = vpop.eup %526  ;;  %v497_v42 = vmul.f32 -1.442695, %v384_v40 }
 0x278   :  { %v529_v43 = vpop.eup %528  ;;  %v402_v44 = vadd.f32 1.0, %v527_v41 }
 0x279   :  { %v406_v45 = vmul.f32 %v529_v43, %v401_v38  ;;  %530 = vpow2.f32 %v497_v42  ;;  %vm411_vm0 = vweird.f32 %v529_v43 }
 0x27a   :  { %532 = vrcp.f32 %v402_v44  ;;  %vm412_vm2 = vmor %vm410_vm1, %vm411_vm0  ;;  %v431_v61 = vand.u32 2147483648, %v402_v44  ;;  %v429_v63 = vand.u32 2147483647, %v402_v44  ;;  %vm425_vm5 = vweird.f32 %v402_v44 }
 0x27b   :  { %v407_v36 = vsub.f32 1.0, %v406_v45 }
 0x27c   :  { %v386_v47 = vpop.f32.mrf.mxu3  ;;  %v432_v3 = vor.u32 1.1754944e-38, %v431_v61  ;;  %vm430_vm7 = vcmp.eq.f32.partialorder %v429_v63, 8.507059e+37 }
 0x27d   :  { %v408_v48 = vmul.f32 %v529_v43, %v407_v36  ;;  %v387_v49 = vadd.f32 %v386_v47, %v359_v29 }
 0x27f   :  { %v531_v51 = vpop.eup %530  ;;  %v498_v52 = vmul.f32 -1.442695, %v387_v49  ;;  %v409_v53 = vadd.f32 %v529_v43, %v408_v48 }
 0x280   :  { %v533_v54 = vpop.eup %532  ;;  %v403_v56 = vadd.f32 1.0, %v531_v51 }
 0x281   :  { %v421_v57 = vmul.f32 %v533_v54, %v402_v44  ;;  %534 = vpow2.f32 %v498_v52  ;;  %v413_v58 = vsel %vm412_vm2, %v529_v43, %v409_v53  ;;  %vm426_vm4 = vweird.f32 %v533_v54 }
 0x282   :  { %536 = vrcp.f32 %v403_v56  ;;  %v418_v59 = vsel %vm415_vm3, %v417_v55, %v413_v58  ;;  %vm427_vm6 = vmor %vm425_vm5, %vm426_vm4  ;;  %v446_v9 = vand.u32 2147483648, %v403_v56  ;;  %v444_v11 = vand.u32 2147483647, %v403_v56 }
 0x283   :  { %v422_v60 = vsub.f32 1.0, %v421_v57  ;;  %465 = vst [vmem:[#allocation13] sm:$0xff] %v418_v59  ;;  %vm440_vm9 = vweird.f32 %v403_v56 }
 0x284   :  { %v447_v14 = vor.u32 1.1754944e-38, %v446_v9  ;;  %vm445_vm11 = vcmp.eq.f32.partialorder %v444_v11, 8.507059e+37 }
 0x285   :  { %v423_v62 = vmul.f32 %v533_v54, %v422_v60 }
 0x287   :  { %v535_v0 = vpop.eup %534  ;;  %v424_v1 = vadd.f32 %v533_v54, %v423_v62 }
 0x288   :  { %v537_v2 = vpop.eup %536  ;;  %v404_v4 = vadd.f32 1.0, %v535_v0 }
 0x289   :  { %v436_v5 = vmul.f32 %v537_v2, %v403_v56  ;;  %v428_v6 = vsel %vm427_vm6, %v533_v54, %v424_v1  ;;  %vm441_vm8 = vweird.f32 %v537_v2 }
 0x28a   :  { %538 = vrcp.f32 %v404_v4  ;;  %v433_v7 = vsel %vm430_vm7, %v432_v3, %v428_v6  ;;  %vm442_vm10 = vmor %vm440_vm9, %vm441_vm8  ;;  %v461_v19 = vand.u32 2147483648, %v404_v4  ;;  %v459_v21 = vand.u32 2147483647, %v404_v4 }
 0x28b   :  { %v437_v8 = vsub.f32 1.0, %v436_v5  ;;  %466 = vst [vmem:[#allocation13 + $0x8] sm:$0xff] %v433_v7  ;;  %vm455_vm13 = vweird.f32 %v404_v4 }
 0x28c   :  { %v462_v23 = vor.u32 1.1754944e-38, %v461_v19  ;;  %vm460_vm15 = vcmp.eq.f32.partialorder %v459_v21, 8.507059e+37 }
 0x28d   :  { %v438_v10 = vmul.f32 %v537_v2, %v437_v8 }
 0x28f   :  { %v439_v12 = vadd.f32 %v537_v2, %v438_v10 }
 0x290   :  { %v539_v13 = vpop.eup %538 }
 0x291   :  { %v451_v15 = vmul.f32 %v539_v13, %v404_v4  ;;  %v443_v16 = vsel %vm442_vm10, %v537_v2, %v439_v12  ;;  %vm456_vm12 = vweird.f32 %v539_v13 }
 0x292   :  { %v448_v17 = vsel %vm445_vm11, %v447_v14, %v443_v16  ;;  %vm457_vm14 = vmor %vm455_vm13, %vm456_vm12 }
 0x293   :  { %v452_v18 = vsub.f32 1.0, %v451_v15  ;;  %467 = vst [vmem:[#allocation13 + $0x10] sm:$0xff] %v448_v17 }
 0x295   :  { %v453_v20 = vmul.f32 %v539_v13, %v452_v18 }
 0x297   :  { %v454_v22 = vadd.f32 %v539_v13, %v453_v20 }
 0x299   :  { %v458_v24 = vsel %vm457_vm14, %v539_v13, %v454_v22 }
 0x29a   :  { %v463_v25 = vsel %vm460_vm15, %v462_v23, %v458_v24 }
 0x29b   :  { %468 = vst [vmem:[#allocation13 + $0x18] sm:$0xff] %v463_v25 }
 0x29c   :  { %481 = dma.vmem_to_hbm [thread:$0]  %s474_s24, 512, %s476_s27, [#allocation4], %s720_s1, %s720_s1, %s721_s10  }
 0x29d   :  { %716 = dma.done.wait [#allocation4], 512  }
 0x29e   :  { %717 = vsyncadd [#allocation4], 4294966784 }
 0x29f   :  { %486 = vsyncpa [#allocation3], 1 }
 0x2a0   :  { %487 = vsyncpa [#allocation6], 1 }
 0x2a1   :  { %488 = vsyncpa [#allocation9], 1 }
 0x2a2   :  { %489 = vsyncpa [#allocation12], 1 }
 0x2a3   :  { %490 = vsyncpa [#allocation4], 1 }

</bundles_post_ra>
